<compile_context>
chip_gen: v6e
topology: v6e:2x2x1
jax: 0.10.0
libtpu: 0.0.40
codegen_flags: <defaults>
</compile_context>

<pallas_src>
import functools
import math

import jax
import jax.numpy as jnp
from jax import lax
from jax.experimental import pallas as pl
from jax.experimental.pallas import tpu as pltpu


# ----------------------------- Pallas kernel -------------------------------


def _sgc_kernel(nzidx_ref, nzcnt_ref,                     # scalar-prefetch (SMEM)
                x_ref, a_ref, p_ref, wenc_ref, benc_ref, wconv_ref, bconv_ref,
                wout_ref, bout_ref,
                out_ref,
                h_ref, agg_ref, pooled_ref,
                *, n_layers, tn, tk):
    l = pl.program_id(0)                 # 0 = encoder pass, 1..n_layers = convs
    t = pl.program_id(1)                 # node row tile
    k = pl.program_id(2)                 # adjacency column tile (block-sparse)
    n_tiles = pl.num_programs(1)
    n_kmax = pl.num_programs(2)
    row0 = pl.multiple_of(t * tn, tn)    # aligned row offset of this tile

    # ---------------- pass 0: node encoder (h0 = x @ W_enc + b_enc) ----------
    @pl.when((l == 0) & (k == 0))
    def _encoder():
        h0 = jnp.dot(x_ref[...], wenc_ref[...],
                     preferred_element_type=jnp.float32) + benc_ref[...]
        h_ref[0, pl.ds(row0, tn), :] = h0.astype(h_ref.dtype)        # slot 0

    # ---------------- passes 1..L: block-sparse SGCConv -> ReLU --------------
    @pl.when(l > 0)
    def _conv():
        rslot = lax.rem(l - 1, 2)                     # read slot  (ping-pong)
        wslot = lax.rem(l, 2)                         # write slot

        @pl.when(k == 0)
        def _init():
            agg_ref[...] = jnp.zeros_like(agg_ref)

        # accumulate only over nonzero adjacency column tiles of this row tile
        @pl.when(k < nzcnt_ref[t])
        def _acc():
            col = nzidx_ref[t, k]
            coff = pl.multiple_of(col * tk, tk)
            h_chunk = h_ref[rslot, pl.ds(coff, tk), :]            # (tk, H) bf16
            agg_ref[...] += jnp.dot(a_ref[...], h_chunk,
                                    preferred_element_type=jnp.float32)

        # last K step: per-layer linear, bias, ReLU, store; fused pooling on
        # the final layer while h_new is still live in vregs.
        @pl.when(k == n_kmax - 1)
        def _finalize():
            h_new = jnp.dot(agg_ref[...].astype(jnp.bfloat16), wconv_ref[0],
                            preferred_element_type=jnp.float32) + bconv_ref[0]
            h_new = jnp.maximum(h_new, 0.0)
            h_bf = h_new.astype(jnp.bfloat16)
            h_ref[wslot, pl.ds(row0, tn), :] = h_bf

            @pl.when(l == n_layers)
            def _pool():
                @pl.when(t == 0)
                def _pinit():
                    pooled_ref[...] = jnp.zeros_like(pooled_ref)
                pooled_ref[...] += jnp.dot(p_ref[...], h_bf,
                                           preferred_element_type=jnp.float32)

    # ---------------- final grid step: fc_out on pooled features -------------
    @pl.when((l == n_layers) & (t == n_tiles - 1) & (k == n_kmax - 1))
    def _final():
        out = jnp.dot(pooled_ref[...], wout_ref[...],
                      preferred_element_type=jnp.float32) + bout_ref[...]
        out_ref[...] = out.astype(out_ref.dtype)


# ------------------------------ wrapper -------------------------------------


def _round_up(v, m):
    return ((v + m - 1) // m) * m


def _pad2(arr, rows, cols):
    out = jnp.zeros((rows, cols), arr.dtype)
    return out.at[: arr.shape[0], : arr.shape[1]].set(arr)


def sgc_forward_pallas(x, a_norm, pool_mat, params, *, n_layers,
                       tile_n=256, tile_k=256):
    assert n_layers >= 1
    num_nodes, x_dim = x.shape
    num_graphs = pool_mat.shape[0]
    hidden = params["w_enc"].shape[1]
    out_dim = params["w_out"].shape[1]

    # padded (lane-dense) dims
    h_pad = _round_up(hidden, 128)
    xd_pad = _round_up(x_dim, 128)
    od_pad = _round_up(out_dim, 128)
    g_pad = _round_up(num_graphs, 8)
    tn = min(tile_n, _round_up(num_nodes, 128))
    tk = min(tile_k, _round_up(num_nodes, 128))
    n_pad = _round_up(num_nodes, math.lcm(tn, tk))
    n_tiles = n_pad // tn
    n_ktiles = n_pad // tk

    # pad + cast: bf16 for the big streamed operands, f32 for biases / fc_out
    x_p = _pad2(x, n_pad, xd_pad).astype(jnp.bfloat16)
    a_p = _pad2(a_norm, n_pad, n_pad).astype(jnp.bfloat16)
    p_p = _pad2(pool_mat, g_pad, n_pad).astype(jnp.bfloat16)   # 0/1 -> exact
    wenc = _pad2(params["w_enc"], xd_pad, h_pad).astype(jnp.bfloat16)
    benc = _pad2(params["b_enc"], 1, h_pad).astype(jnp.float32)
    wconv = jnp.zeros((n_layers, h_pad, h_pad), jnp.bfloat16).at[
        :, :hidden, :hidden].set(params["w_convs"].astype(jnp.bfloat16))
    bconv = jnp.zeros((n_layers, 1, h_pad), jnp.float32).at[
        :, :, :hidden].set(params["b_convs"].astype(jnp.float32))
    wout = _pad2(params["w_out"], h_pad, od_pad).astype(jnp.float32)
    bout = _pad2(params["b_out"], 1, od_pad).astype(jnp.float32)

    # ---- block-sparsity metadata (scalar-prefetched page table for A) -------
    # nz[t, c] = "tile (t, c) of A has any nonzero"; nzidx[t, :] lists the
    # nonzero column tiles first (ascending), padded by repeating the last
    # valid index so skipped K steps keep the same block index (no DMA).
    blk = a_p.reshape(n_tiles, tn, n_ktiles, tk)
    nz = jnp.any(blk != 0, axis=(1, 3))
    nzcnt = jnp.sum(nz, axis=1).astype(jnp.int32)
    k_iota = jnp.arange(n_ktiles, dtype=jnp.int32)[None, :]
    sort_keys = jnp.where(nz, k_iota, k_iota + n_ktiles)       # distinct keys
    order = jnp.argsort(sort_keys, axis=1).astype(jnp.int32)
    last_valid = jnp.take_along_axis(
        order, jnp.maximum(nzcnt - 1, 0)[:, None], axis=1)
    nzidx = jnp.where(k_iota < nzcnt[:, None], order, last_valid).astype(jnp.int32)

    grid = (n_layers + 1, n_tiles, n_ktiles)

    # layer-aware index maps: block indices repeat on passes where the operand
    # is unused, so Pallas skips the DMA.
    def x_map(l, t, k, nzidx_r, nzcnt_r):
        return (jnp.where(l == 0, t, 0), 0)

    def a_map(l, t, k, nzidx_r, nzcnt_r):
        tt = jnp.where(l == 0, 0, t)
        kk = jnp.where(l == 0, 0, k)
        return (tt, nzidx_r[tt, kk])

    def p_map(l, t, k, nzidx_r, nzcnt_r):
        return (0, jnp.where(l == n_layers, t, 0))

    def wconv_map(l, t, k, nzidx_r, nzcnt_r):
        return (jnp.maximum(l - 1, 0), 0, 0)

    def const_map2(l, t, k, nzidx_r, nzcnt_r):
        return (0, 0)

    in_specs = [
        pl.BlockSpec((tn, xd_pad), x_map),                   # x row tile
        pl.BlockSpec((tn, tk), a_map),                       # A nonzero tile
        pl.BlockSpec((g_pad, tn), p_map),                    # pooling tile
        pl.BlockSpec((xd_pad, h_pad), const_map2),           # W_enc
        pl.BlockSpec((1, h_pad), const_map2),                # b_enc
        pl.BlockSpec((1, h_pad, h_pad), wconv_map),          # W_conv[l-1]
        pl.BlockSpec((1, 1, h_pad), wconv_map),              # b_conv[l-1]
        pl.BlockSpec((h_pad, od_pad), const_map2),           # W_out
        pl.BlockSpec((1, od_pad), const_map2),               # b_out
    ]
    out_spec = pl.BlockSpec((g_pad, od_pad), const_map2)     # resident output

    scratch_shapes = [
        pltpu.VMEM((2, n_pad, h_pad), jnp.bfloat16),  # ping-pong node features
        pltpu.VMEM((tn, h_pad), jnp.float32),         # aggregation accumulator
        pltpu.VMEM((g_pad, h_pad), jnp.float32),      # pooled accumulator
    ]

    # VMEM budget: resident scratch + double-buffered inputs + output block.
    est = (2 * n_pad * h_pad * 2 + tn * h_pad * 4 + g_pad * h_pad * 4
           + 2 * (tn * xd_pad * 2 + tn * tk * 2 + g_pad * tn * 2
                  + xd_pad * h_pad * 2 + h_pad * 4
                  + h_pad * h_pad * 2 + h_pad * 4
                  + h_pad * od_pad * 4 + od_pad * 4)
           + 2 * g_pad * od_pad * 4)
    try:
        vmem_cap = int(getattr(pltpu.get_tpu_info(), "vmem_capacity_bytes",
                               64 * 2**20)) or 64 * 2**20
    except Exception:
        vmem_cap = 64 * 2**20
    cap = max(32 * 2**20, min(100 * 2**20, int(0.75 * vmem_cap)))   # 48 MiB on v7x
    vmem_limit = int(min(cap, max(32 * 2**20, 2 * est)))

    # advisory cost estimate so XLA schedules surrounding ops around the kernel
    flops = (2 * n_pad * xd_pad * h_pad
             + n_layers * (2 * n_pad * n_pad * h_pad + 2 * n_pad * h_pad * h_pad)
             + 2 * g_pad * n_pad * h_pad + 2 * g_pad * h_pad * od_pad)
    bytes_accessed = (n_layers * n_pad * n_pad * 2 + n_pad * xd_pad * 2
                      + g_pad * n_pad * 2 + xd_pad * h_pad * 2
                      + n_layers * (h_pad * h_pad * 2 + h_pad * 4)
                      + h_pad * od_pad * 4 + g_pad * od_pad * 4)
    cost = pl.CostEstimate(flops=int(flops), transcendentals=0,
                           bytes_accessed=int(bytes_accessed))

    kernel = functools.partial(_sgc_kernel, n_layers=n_layers, tn=tn, tk=tk)

    out_full = pl.pallas_call(
        kernel,
        out_shape=jax.ShapeDtypeStruct((g_pad, od_pad), jnp.float32),
        grid_spec=pltpu.PrefetchScalarGridSpec(
            num_scalar_prefetch=2,
            grid=grid,
            in_specs=in_specs,
            out_specs=out_spec,
            scratch_shapes=scratch_shapes),
        compiler_params=pltpu.CompilerParams(
            dimension_semantics=("arbitrary", "arbitrary", "arbitrary"),
            vmem_limit_bytes=vmem_limit),
        cost_estimate=cost,
    )(nzidx, nzcnt, x_p, a_p, p_p, wenc, benc, wconv, bconv, wout, bout)

    return out_full[:num_graphs, :out_dim]


# ------------------------------ JAX glue ------------------------------------


def build_dense_graph(edge_index, edge_atten, batch, num_nodes, num_graphs):
    """Densify the sparse graph into A_norm (N, N) and pooling matrix P (G, N)."""
    src, dst = edge_index[0], edge_index[1]
    # GCN-style degrees with self loops
    deg = jnp.ones((num_nodes,), jnp.float32).at[dst].add(
        jnp.ones(src.shape, jnp.float32))
    dinv = jax.lax.rsqrt(deg)
    norm = dinv[dst] * dinv[src]
    # TODO(synk): this dynamic per-edge scatter-add stays in plain JAX (no clean
    # Pallas equivalent); the dense/tiled matmuls it enables run inside the kernel.
    a = jnp.zeros((num_nodes, num_nodes), jnp.float32)
    a = a.at[dst, src].add(norm * edge_atten)        # attended messages
    a = a + jnp.diag(dinv * dinv)                    # self loops (atten = 1)
    pool = (batch[None, :] == jnp.arange(num_graphs)[:, None]).astype(jnp.float32)
    return a, pool


def init_params(key, x_dim, hidden, n_layers, out_dim):
    """Deterministic torch.nn.Linear-style init (uniform(-1/sqrt(fan_in), ...))."""
    def linear(k, fan_in, fan_out):
        kw, kb = jax.random.split(k)
        bound = 1.0 / jnp.sqrt(fan_in)
        w = jax.random.uniform(kw, (fan_in, fan_out), jnp.float32, -bound, bound)
        b = jax.random.uniform(kb, (1, fan_out), jnp.float32, -bound, bound)
        return w, b

    keys = jax.random.split(key, n_layers + 2)
    w_enc, b_enc = linear(keys[0], x_dim, hidden)
    w_convs, b_convs = [], []
    for l in range(n_layers):
        w, b = linear(keys[1 + l], hidden, hidden)
        w_convs.append(w)
        b_convs.append(b)
    w_out, b_out = linear(keys[-1], hidden, out_dim)
    return {
        "w_enc": w_enc, "b_enc": b_enc,
        "w_convs": jnp.stack(w_convs),               # (L, hidden, hidden)
        "b_convs": jnp.stack(b_convs),               # (L, 1, hidden)
        "w_out": w_out, "b_out": b_out,
    }


def sgc_forward_ref(x, a_norm, pool_mat, params, n_layers):
    """Pure-JAX f32 reference of the same forward pass."""
    h = x @ params["w_enc"] + params["b_enc"]
    for l in range(n_layers):
        h = a_norm @ h
        h = h @ params["w_convs"][l] + params["b_convs"][l]
        h = jnp.maximum(h, 0.0)
    g = pool_mat @ h
    return g @ params["w_out"] + params["b_out"]


# ------------------------------- main ---------------------------------------


if __name__ == "__main__":
    key = jax.random.PRNGKey(0)

    # model_config
    n_layers = 2
    hidden = 32
    x_dim = 8
    num_class = 2
    multi_label = False
    out_dim = 1 if (num_class == 2 and not multi_label) else num_class

    # small synthetic graph batch: 2 graphs x 8 nodes
    num_nodes = 16
    num_graphs = 2
    num_edges = 24

    k_x, k_e, k_a, k_p = jax.random.split(key, 4)
    x = jax.random.normal(k_x, (num_nodes, x_dim), jnp.float32)

    # edges within each graph (nodes 0..7 -> graph 0, nodes 8..15 -> graph 1)
    e_per_graph = num_edges // num_graphs
    ks, kd = jax.random.split(k_e)
    src = jnp.concatenate([
        jax.random.randint(jax.random.fold_in(ks, g), (e_per_graph,), 0, 8) + 8 * g
        for g in range(num_graphs)])
    dst = jnp.concatenate([
        jax.random.randint(jax.random.fold_in(kd, g), (e_per_graph,), 0, 8) + 8 * g
        for g in range(num_graphs)])
    edge_index = jnp.stack([src, dst]).astype(jnp.int32)

    batch = jnp.repeat(jnp.arange(num_graphs, dtype=jnp.int32),
                       num_nodes // num_graphs)
    edge_atten = jax.nn.sigmoid(jax.random.normal(k_a, (num_edges,), jnp.float32))

    params = init_params(k_p, x_dim, hidden, n_layers, out_dim)
    a_norm, pool_mat = build_dense_graph(edge_index, edge_atten, batch,
                                         num_nodes, num_graphs)

    fwd = jax.jit(functools.partial(sgc_forward_pallas, n_layers=n_layers))
    out = jax.block_until_ready(fwd(x, a_norm, pool_mat, params))
    assert out.shape == (num_graphs, out_dim)

    ref = sgc_forward_ref(x, a_norm, pool_mat, params, n_layers)
    assert jnp.allclose(out, ref, rtol=1e-1, atol=1e-1), (out, ref)

    print("KERNEL_OK")
</pallas_src>

<mosaic_0001>
module attributes {stable_mosaic.version = 11 : i64} {
  func.func @_sgc_kernel(%arg0: i32, %arg1: i32, %arg2: i32, %arg3: memref<1x1xi32, #tpu.memory_space<smem>>, %arg4: memref<1xi32, #tpu.memory_space<smem>>, %arg5: memref<128x128xbf16, #tpu.memory_space<vmem>>, %arg6: memref<128x128xbf16, #tpu.memory_space<vmem>>, %arg7: memref<8x128xbf16, #tpu.memory_space<vmem>>, %arg8: memref<128x128xbf16, #tpu.memory_space<vmem>>, %arg9: memref<1x128xf32, #tpu.memory_space<vmem>>, %arg10: memref<1x128x128xbf16, #tpu.memory_space<vmem>>, %arg11: memref<1x1x128xf32, #tpu.memory_space<vmem>>, %arg12: memref<128x128xf32, #tpu.memory_space<vmem>>, %arg13: memref<1x128xf32, #tpu.memory_space<vmem>>, %arg14: memref<8x128xf32, #tpu.memory_space<vmem>>, %arg15: memref<2x128x128xbf16, #tpu.memory_space<vmem>>, %arg16: memref<128x128xf32, #tpu.memory_space<vmem>>, %arg17: memref<8x128xf32, #tpu.memory_space<vmem>>) attributes {dimension_semantics = [#tpu.dimension_semantics<arbitrary>, #tpu.dimension_semantics<arbitrary>, #tpu.dimension_semantics<arbitrary>], iteration_bounds = array<i64: 3, 1, 1>, scalar_prefetch = 2 : i64, scratch_operands = 3 : i64, tpu.core_type = #tpu.core_type<tc>, window_params = [{transform_indices = @transform_0, window_bounds = array<i64: 128, 128>}, {transform_indices = @transform_1, window_bounds = array<i64: 128, 128>}, {transform_indices = @transform_2, window_bounds = array<i64: 8, 128>}, {pipeline_mode = #tpu.pipeline_mode<synchronous>, transform_indices = @transform_3, window_bounds = array<i64: 128, 128>}, {pipeline_mode = #tpu.pipeline_mode<synchronous>, transform_indices = @transform_4, window_bounds = array<i64: 1, 128>}, {transform_indices = @transform_5, window_bounds = array<i64: 1, 128, 128>}, {transform_indices = @transform_6, window_bounds = array<i64: 1, 1, 128>}, {pipeline_mode = #tpu.pipeline_mode<synchronous>, transform_indices = @transform_7, window_bounds = array<i64: 128, 128>}, {pipeline_mode = #tpu.pipeline_mode<synchronous>, transform_indices = @transform_8, window_bounds = array<i64: 1, 128>}, {pipeline_mode = #tpu.pipeline_mode<synchronous>, transform_indices = @transform_9, window_bounds = array<i64: 8, 128>}]} {
    %c128_i32 = arith.constant 128 : i32
    %0 = arith.muli %arg1, %c128_i32 : i32
    %1 = tpu.assume_multiple %0, 128 : i32
    %c0_i32 = arith.constant 0 : i32
    %2 = arith.cmpi eq, %arg0, %c0_i32 : i32
    %c0_i32_0 = arith.constant 0 : i32
    %3 = arith.cmpi eq, %arg2, %c0_i32_0 : i32
    %4 = arith.andi %2, %3 : i1
    %5 = arith.extui %4 : i1 to i32
    %c0_i32_1 = arith.constant 0 : i32
    %6 = arith.cmpi ne, %5, %c0_i32_1 : i32
    scf.if %6 {
      %c0 = arith.constant 0 : index
      %c0_7 = arith.constant 0 : index
      %17 = vector.load %arg5[%c0, %c0_7] : memref<128x128xbf16, #tpu.memory_space<vmem>>, vector<128x128xbf16>
      %c0_8 = arith.constant 0 : index
      %c0_9 = arith.constant 0 : index
      %18 = vector.load %arg8[%c0_8, %c0_9] : memref<128x128xbf16, #tpu.memory_space<vmem>>, vector<128x128xbf16>
      %cst = arith.constant dense<0.000000e+00> : vector<128x128xf32>
      %19 = tpu.matmul %17, %18, %cst {dimension_numbers = #tpu.dot_dimension_numbers<[1], [0], [0], [1], [0, 0, 1, 1], [], []>} : vector<128x128xbf16>, vector<128x128xbf16>, vector<128x128xf32> -> vector<128x128xf32>
      %c0_10 = arith.constant 0 : index
      %c0_11 = arith.constant 0 : index
      %20 = vector.load %arg9[%c0_10, %c0_11] : memref<1x128xf32, #tpu.memory_space<vmem>>, vector<1x128xf32>
      %21 = vector.broadcast %20 : vector<1x128xf32> to vector<128x128xf32>
      %22 = arith.addf %19, %21 : vector<128x128xf32>
      %23 = arith.truncf %22 : vector<128x128xf32> to vector<128x128xbf16>
      %c0_12 = arith.constant 0 : index
      %24 = arith.index_cast %1 : i32 to index
      %c0_13 = arith.constant 0 : index
      %25 = vector.load %arg15[%c0_12, %24, %c0_13] : memref<2x128x128xbf16, #tpu.memory_space<vmem>>, vector<1x128x128xbf16>
      %26 = vector.shape_cast %25 : vector<1x128x128xbf16> to vector<128x128xbf16>
      %27 = vector.shape_cast %23 : vector<128x128xbf16> to vector<1x128x128xbf16>
      tpu.vector_store %arg15[%c0_12, %24, %c0_13], %27 {strides = array<i32>} : memref<2x128x128xbf16, #tpu.memory_space<vmem>>, vector<1x128x128xbf16>,
    } else {
    }
    %c0_i32_2 = arith.constant 0 : i32
    %7 = arith.cmpi sgt, %arg0, %c0_i32_2 : i32
    %8 = arith.extui %7 : i1 to i32
    %c0_i32_3 = arith.constant 0 : i32
    %9 = arith.cmpi ne, %8, %c0_i32_3 : i32
    scf.if %9 {
      %c1_i32 = arith.constant 1 : i32
      %17 = arith.subi %arg0, %c1_i32 : i32
      %c2_i32_7 = arith.constant 2 : i32
      %18 = arith.remsi %17, %c2_i32_7 : i32
      %c2_i32_8 = arith.constant 2 : i32
      %19 = arith.remsi %arg0, %c2_i32_8 : i32
      %c0_i32_9 = arith.constant 0 : i32
      %20 = arith.cmpi eq, %arg2, %c0_i32_9 : i32
      %21 = arith.extui %20 : i1 to i32
      %c0_i32_10 = arith.constant 0 : i32
      %22 = arith.cmpi ne, %21, %c0_i32_10 : i32
      scf.if %22 {
        %cst = arith.constant 0.000000e+00 : f32
        %31 = vector.broadcast %cst : f32 to vector<128x128xf32>
        %c0 = arith.constant 0 : index
        %c0_14 = arith.constant 0 : index
        %32 = vector.load %arg16[%c0, %c0_14] : memref<128x128xf32, #tpu.memory_space<vmem>>, vector<128x128xf32>
        tpu.vector_store %arg16[%c0, %c0_14], %31 {strides = array<i32>} : memref<128x128xf32, #tpu.memory_space<vmem>>, vector<128x128xf32>,
      } else {
      }
      %23 = arith.index_cast %arg1 : i32 to index
      %24 = memref.load %arg4[%23] : memref<1xi32, #tpu.memory_space<smem>>
      %25 = arith.cmpi slt, %arg2, %24 : i32
      %26 = arith.extui %25 : i1 to i32
      %c0_i32_11 = arith.constant 0 : i32
      %27 = arith.cmpi ne, %26, %c0_i32_11 : i32
      scf.if %27 {
        %31 = arith.index_cast %arg1 : i32 to index
        %32 = arith.index_cast %arg2 : i32 to index
        %33 = memref.load %arg3[%31, %32] : memref<1x1xi32, #tpu.memory_space<smem>>
        %c128_i32_14 = arith.constant 128 : i32
        %34 = arith.muli %33, %c128_i32_14 : i32
        %35 = tpu.assume_multiple %34, 128 : i32
        %36 = arith.index_cast %18 : i32 to index
        %37 = arith.index_cast %35 : i32 to index
        %c0 = arith.constant 0 : index
        %38 = vector.load %arg15[%36, %37, %c0] : memref<2x128x128xbf16, #tpu.memory_space<vmem>>, vector<1x128x128xbf16>
        %39 = vector.shape_cast %38 : vector<1x128x128xbf16> to vector<128x128xbf16>
        %c0_15 = arith.constant 0 : index
        %c0_16 = arith.constant 0 : index
        %40 = vector.load %arg16[%c0_15, %c0_16] : memref<128x128xf32, #tpu.memory_space<vmem>>, vector<128x128xf32>
        %c0_17 = arith.constant 0 : index
        %c0_18 = arith.constant 0 : index
        %41 = vector.load %arg6[%c0_17, %c0_18] : memref<128x128xbf16, #tpu.memory_space<vmem>>, vector<128x128xbf16>
        %cst = arith.constant dense<0.000000e+00> : vector<128x128xf32>
        %42 = tpu.matmul %41, %39, %cst {dimension_numbers = #tpu.dot_dimension_numbers<[1], [0], [0], [1], [0, 0, 1, 1], [], []>} : vector<128x128xbf16>, vector<128x128xbf16>, vector<128x128xf32> -> vector<128x128xf32>
        %43 = arith.addf %40, %42 : vector<128x128xf32>
        %c0_19 = arith.constant 0 : index
        %c0_20 = arith.constant 0 : index
        %44 = vector.load %arg16[%c0_19, %c0_20] : memref<128x128xf32, #tpu.memory_space<vmem>>, vector<128x128xf32>
        tpu.vector_store %arg16[%c0_19, %c0_20], %43 {strides = array<i32>} : memref<128x128xf32, #tpu.memory_space<vmem>>, vector<128x128xf32>,
      } else {
      }
      %c0_i32_12 = arith.constant 0 : i32
      %28 = arith.cmpi eq, %arg2, %c0_i32_12 : i32
      %29 = arith.extui %28 : i1 to i32
      %c0_i32_13 = arith.constant 0 : i32
      %30 = arith.cmpi ne, %29, %c0_i32_13 : i32
      scf.if %30 {
        %c0 = arith.constant 0 : index
        %c0_14 = arith.constant 0 : index
        %31 = vector.load %arg16[%c0, %c0_14] : memref<128x128xf32, #tpu.memory_space<vmem>>, vector<128x128xf32>
        %32 = arith.truncf %31 : vector<128x128xf32> to vector<128x128xbf16>
        %c0_15 = arith.constant 0 : index
        %c0_16 = arith.constant 0 : index
        %c0_17 = arith.constant 0 : index
        %33 = vector.load %arg10[%c0_15, %c0_16, %c0_17] : memref<1x128x128xbf16, #tpu.memory_space<vmem>>, vector<1x128x128xbf16>
        %34 = vector.shape_cast %33 : vector<1x128x128xbf16> to vector<128x128xbf16>
        %cst = arith.constant dense<0.000000e+00> : vector<128x128xf32>
        %35 = tpu.matmul %32, %34, %cst {dimension_numbers = #tpu.dot_dimension_numbers<[1], [0], [0], [1], [0, 0, 1, 1], [], []>} : vector<128x128xbf16>, vector<128x128xbf16>, vector<128x128xf32> -> vector<128x128xf32>
        %c0_18 = arith.constant 0 : index
        %c0_19 = arith.constant 0 : index
        %c0_20 = arith.constant 0 : index
        %36 = vector.load %arg11[%c0_18, %c0_19, %c0_20] : memref<1x1x128xf32, #tpu.memory_space<vmem>>, vector<1x1x128xf32>
        %37 = vector.shape_cast %36 : vector<1x1x128xf32> to vector<1x128xf32>
        %38 = vector.broadcast %37 : vector<1x128xf32> to vector<128x128xf32>
        %39 = arith.addf %35, %38 : vector<128x128xf32>
        %cst_21 = arith.constant 0.000000e+00 : f32
        %40 = vector.broadcast %cst_21 : f32 to vector<128x128xf32>
        %41 = arith.maximumf %39, %40 : vector<128x128xf32>
        %42 = arith.truncf %41 : vector<128x128xf32> to vector<128x128xbf16>
        %43 = arith.index_cast %19 : i32 to index
        %44 = arith.index_cast %1 : i32 to index
        %c0_22 = arith.constant 0 : index
        %45 = vector.load %arg15[%43, %44, %c0_22] : memref<2x128x128xbf16, #tpu.memory_space<vmem>>, vector<1x128x128xbf16>
        %46 = vector.shape_cast %45 : vector<1x128x128xbf16> to vector<128x128xbf16>
        %47 = vector.shape_cast %42 : vector<128x128xbf16> to vector<1x128x128xbf16>
        tpu.vector_store %arg15[%43, %44, %c0_22], %47 {strides = array<i32>} : memref<2x128x128xbf16, #tpu.memory_space<vmem>>, vector<1x128x128xbf16>,
        %c2_i32_23 = arith.constant 2 : i32
        %48 = arith.cmpi eq, %arg0, %c2_i32_23 : i32
        %49 = arith.extui %48 : i1 to i32
        %c0_i32_24 = arith.constant 0 : i32
        %50 = arith.cmpi ne, %49, %c0_i32_24 : i32
        scf.if %50 {
          %c0_i32_25 = arith.constant 0 : i32
          %51 = arith.cmpi eq, %arg1, %c0_i32_25 : i32
          %52 = arith.extui %51 : i1 to i32
          %c0_i32_26 = arith.constant 0 : i32
          %53 = arith.cmpi ne, %52, %c0_i32_26 : i32
          scf.if %53 {
            %cst_34 = arith.constant 0.000000e+00 : f32
            %59 = vector.broadcast %cst_34 : f32 to vector<8x128xf32>
            %c0_35 = arith.constant 0 : index
            %c0_36 = arith.constant 0 : index
            %60 = vector.load %arg17[%c0_35, %c0_36] : memref<8x128xf32, #tpu.memory_space<vmem>>, vector<8x128xf32>
            tpu.vector_store %arg17[%c0_35, %c0_36], %59 {strides = array<i32>} : memref<8x128xf32, #tpu.memory_space<vmem>>, vector<8x128xf32>,
          } else {
          }
          %c0_27 = arith.constant 0 : index
          %c0_28 = arith.constant 0 : index
          %54 = vector.load %arg17[%c0_27, %c0_28] : memref<8x128xf32, #tpu.memory_space<vmem>>, vector<8x128xf32>
          %c0_29 = arith.constant 0 : index
          %c0_30 = arith.constant 0 : index
          %55 = vector.load %arg7[%c0_29, %c0_30] : memref<8x128xbf16, #tpu.memory_space<vmem>>, vector<8x128xbf16>
          %cst_31 = arith.constant dense<0.000000e+00> : vector<8x128xf32>
          %56 = tpu.matmul %55, %42, %cst_31 {dimension_numbers = #tpu.dot_dimension_numbers<[1], [0], [0], [1], [0, 0, 1, 1], [], []>} : vector<8x128xbf16>, vector<128x128xbf16>, vector<8x128xf32> -> vector<8x128xf32>
          %57 = arith.addf %54, %56 : vector<8x128xf32>
          %c0_32 = arith.constant 0 : index
          %c0_33 = arith.constant 0 : index
          %58 = vector.load %arg17[%c0_32, %c0_33] : memref<8x128xf32, #tpu.memory_space<vmem>>, vector<8x128xf32>
          tpu.vector_store %arg17[%c0_32, %c0_33], %57 {strides = array<i32>} : memref<8x128xf32, #tpu.memory_space<vmem>>, vector<8x128xf32>,
        } else {
        }
      } else {
      }
    } else {
    }
    %c2_i32 = arith.constant 2 : i32
    %10 = arith.cmpi eq, %arg0, %c2_i32 : i32
    %c0_i32_4 = arith.constant 0 : i32
    %11 = arith.cmpi eq, %arg1, %c0_i32_4 : i32
    %12 = arith.andi %10, %11 : i1
    %c0_i32_5 = arith.constant 0 : i32
    %13 = arith.cmpi eq, %arg2, %c0_i32_5 : i32
    %14 = arith.andi %12, %13 : i1
    %15 = arith.extui %14 : i1 to i32
    %c0_i32_6 = arith.constant 0 : i32
    %16 = arith.cmpi ne, %15, %c0_i32_6 : i32
    scf.if %16 {
      %c0 = arith.constant 0 : index
      %c0_7 = arith.constant 0 : index
      %17 = vector.load %arg17[%c0, %c0_7] : memref<8x128xf32, #tpu.memory_space<vmem>>, vector<8x128xf32>
      %c0_8 = arith.constant 0 : index
      %c0_9 = arith.constant 0 : index
      %18 = vector.load %arg12[%c0_8, %c0_9] : memref<128x128xf32, #tpu.memory_space<vmem>>, vector<128x128xf32>
      %cst = arith.constant dense<0.000000e+00> : vector<8x128xf32>
      %19 = tpu.matmul %17, %18, %cst {dimension_numbers = #tpu.dot_dimension_numbers<[1], [0], [0], [1], [0, 0, 1, 1], [], []>} : vector<8x128xf32>, vector<128x128xf32>, vector<8x128xf32> -> vector<8x128xf32>
      %c0_10 = arith.constant 0 : index
      %c0_11 = arith.constant 0 : index
      %20 = vector.load %arg13[%c0_10, %c0_11] : memref<1x128xf32, #tpu.memory_space<vmem>>, vector<1x128xf32>
      %21 = vector.broadcast %20 : vector<1x128xf32> to vector<8x128xf32>
      %22 = arith.addf %19, %21 : vector<8x128xf32>
      %c0_12 = arith.constant 0 : index
      %c0_13 = arith.constant 0 : index
      %23 = vector.load %arg14[%c0_12, %c0_13] : memref<8x128xf32, #tpu.memory_space<vmem>>, vector<8x128xf32>
      tpu.vector_store %arg14[%c0_12, %c0_13], %22 {strides = array<i32>} : memref<8x128xf32, #tpu.memory_space<vmem>>, vector<8x128xf32>,
    } else {
    }
    return
  }
  func.func @transform_0(%arg0: i32, %arg1: i32, %arg2: i32, %arg3: memref<1x1xi32, #tpu.memory_space<smem>>, %arg4: memref<1xi32, #tpu.memory_space<smem>>) -> (i32, i32) {
    %c0_i32 = arith.constant 0 : i32
    %0 = arith.cmpi eq, %arg0, %c0_i32 : i32
    %c0_i32_0 = arith.constant 0 : i32
    %1 = arith.select %0, %arg1, %c0_i32_0 : i32
    %c0_i32_1 = arith.constant 0 : i32
    %c0_i32_2 = arith.constant 0 : i32
    return %1, %c0_i32_1 : i32, i32
  }
  func.func @transform_1(%arg0: i32, %arg1: i32, %arg2: i32, %arg3: memref<1x1xi32, #tpu.memory_space<smem>>, %arg4: memref<1xi32, #tpu.memory_space<smem>>) -> (i32, i32) {
    %c0_i32 = arith.constant 0 : i32
    %0 = arith.cmpi eq, %arg0, %c0_i32 : i32
    %c0_i32_0 = arith.constant 0 : i32
    %1 = arith.select %0, %c0_i32_0, %arg1 : i32
    %c0_i32_1 = arith.constant 0 : i32
    %2 = arith.cmpi eq, %arg0, %c0_i32_1 : i32
    %c0_i32_2 = arith.constant 0 : i32
    %3 = arith.select %2, %c0_i32_2, %arg2 : i32
    %4 = arith.index_cast %1 : i32 to index
    %5 = arith.index_cast %3 : i32 to index
    %6 = memref.load %arg3[%4, %5] : memref<1x1xi32, #tpu.memory_space<smem>>
    %c0_i32_3 = arith.constant 0 : i32
    return %1, %6 : i32, i32
  }
  func.func @transform_2(%arg0: i32, %arg1: i32, %arg2: i32, %arg3: memref<1x1xi32, #tpu.memory_space<smem>>, %arg4: memref<1xi32, #tpu.memory_space<smem>>) -> (i32, i32) {
    %c2_i32 = arith.constant 2 : i32
    %0 = arith.cmpi eq, %arg0, %c2_i32 : i32
    %c0_i32 = arith.constant 0 : i32
    %1 = arith.select %0, %arg1, %c0_i32 : i32
    %c0_i32_0 = arith.constant 0 : i32
    %c0_i32_1 = arith.constant 0 : i32
    return %c0_i32_0, %1 : i32, i32
  }
  func.func @transform_3(%arg0: i32, %arg1: i32, %arg2: i32, %arg3: memref<1x1xi32, #tpu.memory_space<smem>>, %arg4: memref<1xi32, #tpu.memory_space<smem>>) -> (i32, i32) {
    %c0_i32 = arith.constant 0 : i32
    %c0_i32_0 = arith.constant 0 : i32
    %c0_i32_1 = arith.constant 0 : i32
    return %c0_i32, %c0_i32_0 : i32, i32
  }
  func.func @transform_4(%arg0: i32, %arg1: i32, %arg2: i32, %arg3: memref<1x1xi32, #tpu.memory_space<smem>>, %arg4: memref<1xi32, #tpu.memory_space<smem>>) -> (i32, i32) {
    %c0_i32 = arith.constant 0 : i32
    %c0_i32_0 = arith.constant 0 : i32
    %c0_i32_1 = arith.constant 0 : i32
    return %c0_i32, %c0_i32_0 : i32, i32
  }
  func.func @transform_5(%arg0: i32, %arg1: i32, %arg2: i32, %arg3: memref<1x1xi32, #tpu.memory_space<smem>>, %arg4: memref<1xi32, #tpu.memory_space<smem>>) -> (i32, i32, i32) {
    %c1_i32 = arith.constant 1 : i32
    %0 = arith.subi %arg0, %c1_i32 : i32
    %c0_i32 = arith.constant 0 : i32
    %1 = arith.maxsi %0, %c0_i32 : i32
    %c0_i32_0 = arith.constant 0 : i32
    %c0_i32_1 = arith.constant 0 : i32
    %c0_i32_2 = arith.constant 0 : i32
    return %1, %c0_i32_0, %c0_i32_1 : i32, i32, i32
  }
  func.func @transform_6(%arg0: i32, %arg1: i32, %arg2: i32, %arg3: memref<1x1xi32, #tpu.memory_space<smem>>, %arg4: memref<1xi32, #tpu.memory_space<smem>>) -> (i32, i32, i32) {
    %c1_i32 = arith.constant 1 : i32
    %0 = arith.subi %arg0, %c1_i32 : i32
    %c0_i32 = arith.constant 0 : i32
    %1 = arith.maxsi %0, %c0_i32 : i32
    %c0_i32_0 = arith.constant 0 : i32
    %c0_i32_1 = arith.constant 0 : i32
    %c0_i32_2 = arith.constant 0 : i32
    return %1, %c0_i32_0, %c0_i32_1 : i32, i32, i32
  }
  func.func @transform_7(%arg0: i32, %arg1: i32, %arg2: i32, %arg3: memref<1x1xi32, #tpu.memory_space<smem>>, %arg4: memref<1xi32, #tpu.memory_space<smem>>) -> (i32, i32) {
    %c0_i32 = arith.constant 0 : i32
    %c0_i32_0 = arith.constant 0 : i32
    %c0_i32_1 = arith.constant 0 : i32
    return %c0_i32, %c0_i32_0 : i32, i32
  }
  func.func @transform_8(%arg0: i32, %arg1: i32, %arg2: i32, %arg3: memref<1x1xi32, #tpu.memory_space<smem>>, %arg4: memref<1xi32, #tpu.memory_space<smem>>) -> (i32, i32) {
    %c0_i32 = arith.constant 0 : i32
    %c0_i32_0 = arith.constant 0 : i32
    %c0_i32_1 = arith.constant 0 : i32
    return %c0_i32, %c0_i32_0 : i32, i32
  }
  func.func @transform_9(%arg0: i32, %arg1: i32, %arg2: i32, %arg3: memref<1x1xi32, #tpu.memory_space<smem>>, %arg4: memref<1xi32, #tpu.memory_space<smem>>) -> (i32, i32) {
    %c0_i32 = arith.constant 0 : i32
    %c0_i32_0 = arith.constant 0 : i32
    %c0_i32_1 = arith.constant 0 : i32
    return %c0_i32, %c0_i32_0 : i32, i32
  }
}

</mosaic_0001>

<bundles_post_ra>
// kernel: sgc_forward_pallas.1
= control target key start
LH: loop header
LB: loop body
LE: loop exit
PB: predicated region body
PF: predicated region fallthrough
CT: control target
= control target key end

     0   :  { %s2466_s21 = smov 0   ;;  %s2468_s22 = smov 0   ;;  %s2684_s0 = inlined_call_operand.<no memory space> [shape: s32[1,1], index: 0, kind: input, shape index: {}]   ;;  %s2685_s1 = inlined_call_operand.<no memory space> [shape: s32[1], index: 1, kind: input, shape index: {}]   ;;  %s2686_s2 = inlined_call_operand.vmem [shape: bf16[128,128], index: 2, kind: input, shape index: {}]   ;;  %s2687_s3 = inlined_call_operand.vmem [shape: bf16[128,128], index: 3, kind: input, shape index: {}]   ;;  %s2688_s4 = inlined_call_operand.vmem [shape: bf16[8,128], index: 4, kind: input, shape index: {}]   ;;  %s2689_s5 = inlined_call_operand.vmem [shape: bf16[128,128], index: 5, kind: input, shape index: {}]   ;;  %s2690_s6 = inlined_call_operand.vmem [shape: f32[1,128], index: 6, kind: input, shape index: {}]   ;;  %s2691_s7 = inlined_call_operand.vmem [shape: bf16[2,128,128], index: 7, kind: input, shape index: {}]   ;;  %s2692_s8 = inlined_call_operand.vmem [shape: f32[2,1,128], index: 8, kind: input, shape index: {}]   ;;  %s2693_s9 = inlined_call_operand.vmem [shape: f32[128,128], index: 9, kind: input, shape index: {}]   ;;  %s2694_s10 = inlined_call_operand.vmem [shape: f32[1,128], index: 10, kind: input, shape index: {}]   ;;  %s2695_s11 = inlined_call_operand.vmem [shape: f32[8,128], index: 11, kind: output, shape index: {}]  }
   0x1   :  { %16 = sst [smem:[#allocation6]] %s2684_s0  ;;  %s2470_s23 = smov 0  }
   0x2   :  { %17 = sst [smem:[#allocation7]] %s2685_s1 }
   0x3 LB: > { %s42_s0 = sadd.s32 1, %s2389_s22  ;;  %p1786_p0 = scmp.ge.s32.totalorder %s2393_s23, 1  ;;  %s2393_s23 = sphi %s2470_s23, %s23_s23   ;;  %s2389_s22 = sphi %s2468_s22, %s2697_s22   ;;  %s2385_s21 = sphi %s2466_s21, %s2696_s21  }
   0x4   : > { %p44_p1 = scmp.ge.s32.totalorder %s42_s0, 3  ;;  %p433_p2 = scmp.lt.s32.totalorder %s2393_s23, 4 }
   0x6   : > { %s2699_s0 = smov (%p44_p1, %s42_s0), 0  ;;  %p434_p3 = pnand %p1786_p0, %p433_p2 }
   0x7   : > { %s525_s1 = sld [smem:[#allocation6]] (!%p434_p3)  ;;  %s2487_s24 = sadd.s32 (!%p434_p3), 4294967295, %s2385_s21 }
   0x8   : > { %437 = sbr.rel (%p434_p3) target bundleno = 1233 (0x4d1), region = 56  ;;  %p555_p4 = scmp.gt.s32.totalorder (!%p434_p3), %s2487_s24, 0 }
   0x9   : > { %p1789_p5 = scmp.lt.s32.totalorder (!%p434_p3), %s2487_s24, 1  ;;  %p576_p6 = scmp.eq.s32.totalorder (!%p434_p3), %s2385_s21, 0 }
   0xd   : > { %s556_s25 = scalar_select %p555_p4, %s2487_s24, 0  ;;  %v2331_v0 = vld [vmem:[%s2689_s5 + $0x38] sm:$0xff] (%p576_p6)   ;;  %v2332_v1 = vld [vmem:[%s2689_s5 + $0x30] sm:$0xff] (%p576_p6)   ;;  %v2333_v2 = vld [vmem:[%s2689_s5 + $0x28] sm:$0xff] (%p576_p6)  }
   0xe   : > { %p529_p7 = scmp.lt.s32.totalorder %s525_s1, 0  ;;  %2103 = vmatprep.subr.bf16.mxu0 (%p576_p6), %v2331_v0  ;;  %2254 = vmatprep.subr.bf16.mxu1 (%p576_p6), %v2331_v0  ;;  %v2334_v3 = vld [vmem:[%s2689_s5 + $0x20] sm:$0xff] (%p576_p6)   ;;  %v2335_v6 = vld [vmem:[%s2689_s5 + $0x18] sm:$0xff] (%p576_p6)   ;;  %v2336_v7 = vld [vmem:[%s2689_s5 + $0x10] sm:$0xff] (%p576_p6)  }
   0xf   : > { %s2701_s25 = smov (!%p1789_p5, %s556_s25), 1  ;;  %581 = sbr.rel (!%p576_p6) target bundleno = 258 (0x102), region = 60  ;;  %2104 = vmatpush3.bf16.msra.mxu0 (%p576_p6), %v2331_v0  ;;  %2262 = vmatpush3.bf16.msra.mxu1 (%p576_p6), %v2331_v0  ;;  %v2339_v4 = vld [vmem:[%s2686_s2] sm:$0xff] (%p576_p6)   ;;  %v2337_v8 = vld [vmem:[%s2689_s5 + $0x8] sm:$0xff] (%p576_p6)   ;;  %v2343_v12 = vld [vmem:[%s2686_s2 + $0x10] sm:$0xff] (%p576_p6)  }
  0x10   : > { %s1896_s26 = sshll.u32 %s2701_s25, 6  ;;  %s570_s29 = scalar_lea.vmem %s2692_s8, %s2701_s25  ;;  %2105 = vmatprep.subr.bf16.mxu0 (%p576_p6), %v2332_v1  ;;  %2255 = vmatprep.subr.bf16.mxu1 (%p576_p6), %v2332_v1  ;;  %v2340_v5 = vld [vmem:[%s2686_s2 + $0x20] sm:$0xff] (%p576_p6)   ;;  %v2341_v10 = vld [vmem:[%s2686_s2 + $0x8] sm:$0xff] (%p576_p6)   ;;  %v2344_v13 = vld [vmem:[%s2686_s2 + $0x30] sm:$0xff] (%p576_p6)  }
  0x11   : > { %s2703_s1 = smov (!%p529_p7, %s525_s1), 0  ;;  %s2503_s13 = scalar_lea.vmem %s2691_s7, %s1896_s26  ;;  %2119 = vmatprep.mubr.bf16.mxu0 (%p576_p6), %v2339_v4  ;;  %2127 = vmatprep.mubr.bf16.mxu1 (%p576_p6), %v2340_v5  ;;  %v2338_v9 = vld [vmem:[%s2689_s5] sm:$0xff] (%p576_p6)   ;;  %v2342_v11 = vld [vmem:[%s2686_s2 + $0x28] sm:$0xff] (%p576_p6)   ;;  %v2345_v14 = vld [vmem:[%s2686_s2 + $0x18] sm:$0xff] (%p576_p6)  }
  0x12   : > { %s1787_s14 = sshll.u32 %s2703_s1, 2  ;;  %v2346_v15 = vld [vmem:[%s2686_s2 + $0x38] sm:$0xff] (%p576_p6)   ;;  %v1803_v18 = vld [vmem:[%s2690_s6] ss:$0 sm:$0xff] (%p576_p6) }
  0x13   : > { %s2508_s17 = scalar_lea.vmem %s2687_s3, %s1787_s14  ;;  %2106 = vmatpush3.bf16.msra.mxu0 (%p576_p6), %v2332_v1  ;;  %2263 = vmatpush3.bf16.msra.mxu1 (%p576_p6), %v2332_v1 }
  0x14   : > { %2107 = vmatprep.subr.bf16.mxu0 %v2333_v2  ;;  %2256 = vmatprep.subr.bf16.mxu1 %v2333_v2 }
  0x17   : > { %2108 = vmatpush3.bf16.msra.mxu0 %v2333_v2  ;;  %2264 = vmatpush3.bf16.msra.mxu1 %v2333_v2 }
  0x18   : > { %2109 = vmatprep.subr.bf16.mxu0 %v2334_v3  ;;  %2257 = vmatprep.subr.bf16.mxu1 %v2334_v3 }
  0x1b   : > { %2110 = vmatpush3.bf16.msra.mxu0 %v2334_v3  ;;  %2265 = vmatpush3.bf16.msra.mxu1 %v2334_v3 }
  0x1c   : > { %2111 = vmatprep.subr.bf16.mxu0 %v2335_v6  ;;  %2258 = vmatprep.subr.bf16.mxu1 %v2335_v6 }
  0x1f   : > { %2112 = vmatpush3.bf16.msra.mxu0 %v2335_v6  ;;  %2266 = vmatpush3.bf16.msra.mxu1 %v2335_v6 }
  0x20   : > { %2113 = vmatprep.subr.bf16.mxu0 %v2336_v7  ;;  %2259 = vmatprep.subr.bf16.mxu1 %v2336_v7 }
  0x23   : > { %2114 = vmatpush3.bf16.msra.mxu0 %v2336_v7  ;;  %2267 = vmatpush3.bf16.msra.mxu1 %v2336_v7 }
  0x24   : > { %2115 = vmatprep.subr.bf16.mxu0 %v2337_v8  ;;  %2260 = vmatprep.subr.bf16.mxu1 %v2337_v8 }
  0x27   : > { %2116 = vmatpush3.bf16.msra.mxu0 %v2337_v8  ;;  %2268 = vmatpush3.bf16.msra.mxu1 %v2337_v8 }
  0x28   : > { %2117 = vmatprep.subr.bf16.mxu0 %v2338_v9  ;;  %2261 = vmatprep.subr.bf16.mxu1 %v2338_v9 }
  0x2b   : > { %2118 = vmatpush3.bf16.msra.mxu0 %v2338_v9  ;;  %2269 = vmatpush3.bf16.msra.mxu1 %v2338_v9 }
  0x2e   : > { %2120 = vmatmul.mubr.bf16.vlgmr.msra.gmra.mxu0 %v2341_v10  ;;  %2128 = vmatmul.mubr.bf16.vlgmr.msra.gmra.mxu1 %v2342_v11 }
  0x2f   : > { %2123 = vmatprep.mubr.bf16.mxu0 %v2343_v12  ;;  %2131 = vmatprep.mubr.bf16.mxu1 %v2344_v13 }
  0x36   : > { %2124 = vmatmul.mubr.bf16.gmra.mxu0 %v2345_v14  ;;  %2132 = vmatmul.mubr.bf16.gmra.mxu1 %v2346_v15 }
  0xee   : > { %v2121_v16 = vpop.f32.mrf.mxu0  ;;  %v2129_v17 = vpop.f32.mrf.mxu1 }
  0xef   : > { %v760_v23 = vadd.f32 %v2121_v16, %v1803_v18  ;;  %v792_v24 = vadd.f32 %v2129_v17, %v1803_v18 }
  0xf0   : > { %v751_v19 = vpop.f32.mrf.mxu0  ;;  %v783_v20 = vpop.f32.mrf.mxu1 }
  0xf1   : > { %v752_v27 = vadd.f32 %v1803_v18, %v751_v19  ;;  %v784_v28 = vadd.f32 %v1803_v18, %v783_v20 }
  0xf2   : > { %v2122_v21 = vpop.f32.mrf.mxu0  ;;  %v2130_v22 = vpop.f32.mrf.mxu1 }
  0xf3   : > { %v763_v25 = vadd.f32 %v2122_v21, %v1803_v18  ;;  %v795_v26 = vadd.f32 %v2130_v22, %v1803_v18 }
  0xf4   : > { %v754_v29 = vpop.f32.mrf.mxu0  ;;  %v786_v30 = vpop.f32.mrf.mxu1 }
  0xf5   : > { %v1943_v31 = vpack.c.bf16 %v763_v25, %v760_v23  ;;  %v1963_v32 = vpack.c.bf16 %v795_v26, %v792_v24  ;;  %v755_v33 = vadd.f32 %v1803_v18, %v754_v29  ;;  %v787_v34 = vadd.f32 %v1803_v18, %v786_v30 }
  0xf6   : > { %v2125_v35 = vpop.f32.mrf.mxu0  ;;  %v2133_v36 = vpop.f32.mrf.mxu1 }
  0xf7   : > { %2015 = vst [vmem:[#allocation2 + $0x8] sm:$0xff] %v1943_v31   ;;  %2019 = vst [vmem:[#allocation2 + $0x28] sm:$0xff] %v1963_v32   ;;  %v1938_v37 = vpack.c.bf16 %v755_v33, %v752_v27  ;;  %v1958_v38 = vpack.c.bf16 %v787_v34, %v784_v28  ;;  %v776_v43 = vadd.f32 %v2125_v35, %v1803_v18 }
  0xf8   : > { %v767_v39 = vpop.f32.mrf.mxu0  ;;  %v799_v40 = vpop.f32.mrf.mxu1  ;;  %v808_v44 = vadd.f32 %v2133_v36, %v1803_v18 }
  0xf9   : > { %1939 = vst [vmem:[#allocation2] sm:$0xff] %v1938_v37   ;;  %2018 = vst [vmem:[#allocation2 + $0x20] sm:$0xff] %v1958_v38   ;;  %v768_v47 = vadd.f32 %v1803_v18, %v767_v39  ;;  %v800_v48 = vadd.f32 %v1803_v18, %v799_v40 }
  0xfa   : > { %v2126_v41 = vpop.f32.mrf.mxu0  ;;  %v2134_v42 = vpop.f32.mrf.mxu1 }
  0xfb   : > { %v779_v45 = vadd.f32 %v2126_v41, %v1803_v18  ;;  %v811_v46 = vadd.f32 %v2134_v42, %v1803_v18 }
  0xfc   : > { %v770_v49 = vpop.f32.mrf.mxu0  ;;  %v802_v50 = vpop.f32.mrf.mxu1 }
  0xfd   : > { %v1953_v51 = vpack.c.bf16 %v779_v45, %v776_v43  ;;  %v1973_v52 = vpack.c.bf16 %v811_v46, %v808_v44  ;;  %v771_v53 = vadd.f32 %v1803_v18, %v770_v49  ;;  %v803_v54 = vadd.f32 %v1803_v18, %v802_v50 }
  0xff   : > { %2017 = vst [vmem:[#allocation2 + $0x18] sm:$0xff] %v1953_v51   ;;  %2021 = vst [vmem:[#allocation2 + $0x38] sm:$0xff] %v1973_v52   ;;  %v1948_v55 = vpack.c.bf16 %v771_v53, %v768_v47  ;;  %v1968_v56 = vpack.c.bf16 %v803_v54, %v800_v48 }
 0x101   : > { %2016 = vst [vmem:[#allocation2 + $0x10] sm:$0xff] %v1948_v55   ;;  %2020 = vst [vmem:[#allocation2 + $0x30] sm:$0xff] %v1968_v56  }
 0x102 PF: > { %p1836_p8 = scmp.le.s32.totalorder %s2385_s21, 0 }
 0x103   : > { %p903_p9 = scmp.lt.s32.totalorder (!%p1836_p8), %s2487_s24, 0  ;;  %s904_s15 = ssub.s32 (!%p1836_p8), 0, %s2487_s24 }
 0x104   : > { %901 = sbr.rel (%p1836_p8) target bundleno = 1003 (0x3eb), region = 64  ;;  %s1838_s16 = smin.u32 (!%p1836_p8), %s2487_s24, %s904_s15 }
 0x105   : > { %p909_p10 = scmp.lt.s32.totalorder (!%p1836_p8), %s2385_s21, 0  ;;  %s906_s18 = sand.u32 (!%p1836_p8), 1, %s1838_s16  }
 0x106   : > { %s910_s19 = ssub.s32 (!%p1836_p8), 0, %s2385_s21  ;;  %s907_s20 = ssub.s32 (!%p1836_p8), 0, %s906_s18 }
 0x107   : > { %s1839_s27 = smin.u32 (!%p1836_p8), %s2385_s21, %s910_s19  ;;  %s934_s26 = sld [smem:[#allocation7]] (!%p1836_p8) }
 0x108   : > { %s912_s1 = sand.u32 (!%p1836_p8), 1, %s1839_s27  }
 0x109   : > { %v2395_v57 = vmov 0.0   ;;  %s2705_s20 = smov (!%p903_p9, %s907_s20), %s906_s18  ;;  %s913_s28 = ssub.s32 0, %s912_s1 }
 0x10a   : > { %918 = vst [vmem:[#allocation3 + $0x30] sm:$0xff] %v2395_v57  ;;  %919 = vst [vmem:[#allocation3] sm:$0xff] %v2395_v57  ;;  %s2707_s28 = smov (!%p909_p10, %s913_s28), %s912_s1 }
 0x10b   : > { %920 = vst [vmem:[#allocation3 + $0x58] sm:$0xff] %v2395_v57  ;;  %921 = vst [vmem:[#allocation3 + $0x18] sm:$0xff] %v2395_v57 }
 0x10c   : > { %922 = vst [vmem:[#allocation3 + $0x50] sm:$0xff] %v2395_v57  ;;  %923 = vst [vmem:[#allocation3 + $0x68] sm:$0xff] %v2395_v57 }
 0x10d   : > { %924 = vst [vmem:[#allocation3 + $0x8] sm:$0xff] %v2395_v57  ;;  %925 = vst [vmem:[#allocation3 + $0x48] sm:$0xff] %v2395_v57  ;;  %p1841_p11 = scmp.le.s32.totalorder %s934_s26, 0 }
 0x10e   : > { %926 = vst [vmem:[#allocation3 + $0x40] sm:$0xff] %v2395_v57  ;;  %927 = vst [vmem:[#allocation3 + $0x20] sm:$0xff] %v2395_v57  ;;  %s946_s30 = sld [smem:[#allocation6]] (!%p1841_p11)  ;;  %s1843_s12 = sshll.u32 (!%p1841_p11), %s2705_s20, 4 }
 0x10f   : > { %928 = vst [vmem:[#allocation3 + $0x10] sm:$0xff] %v2395_v57  ;;  %929 = vst [vmem:[#allocation3 + $0x38] sm:$0xff] %v2395_v57  ;;  %938 = sbr.rel (%p1841_p11) target bundleno = 524 (0x20c), region = 72 }
 0x110   : > { %930 = vst [vmem:[#allocation3 + $0x60] sm:$0xff] %v2395_v57  ;;  %931 = vst [vmem:[#allocation3 + $0x70] sm:$0xff] %v2395_v57 }
 0x111   : > { %932 = vst [vmem:[#allocation3 + $0x78] sm:$0xff] %v2395_v57  ;;  %933 = vst [vmem:[#allocation3 + $0x28] sm:$0xff] %v2395_v57 }
 0x114   : > { %v2355_v58 = vld [vmem:[%s2508_s17] sm:$0xff]   ;;  %s1842_s14 = sshll.u32 %s946_s30, 7  ;;  %v2357_v4 = vld [vmem:[%s2508_s17 + $0x8] sm:$0xff]   ;;  %v2359_v6 = vld [vmem:[%s2508_s17 + $0x10] sm:$0xff]  }
 0x115   : > { %2151 = vmatprep.mubr.bf16.mxu0 %v2355_v58  ;;  %v2356_v59 = vld [vmem:[%s2508_s17 + $0x20] sm:$0xff]   ;;  %s948_s15 = sshra.s32 %s1842_s14, 3  ;;  %v2358_v5 = vld [vmem:[%s2508_s17 + $0x28] sm:$0xff]   ;;  %v2360_v7 = vld [vmem:[%s2508_s17 + $0x30] sm:$0xff]  }
 0x116   : > { %2159 = vmatprep.mubr.bf16.mxu1 %v2356_v59  ;;  %s951_s24 = sadd.s32 %s1843_s12, %s948_s15  ;;  %v2361_v8 = vld [vmem:[%s2508_s17 + $0x18] sm:$0xff]   ;;  %v980_v11 = vld [vmem:[#allocation3 + $0x10] sm:$0xff]  ;;  %v978_v15 = vld [vmem:[#allocation3 + $0x40] sm:$0xff] }
 0x117   : > { %s1844_s16 = sshll.u32 %s951_s24, 2  ;;  %v2362_v9 = vld [vmem:[%s2508_s17 + $0x38] sm:$0xff]   ;;  %v970_v14 = vld [vmem:[#allocation3 + $0x30] sm:$0xff]  ;;  %v971_v26 = vld [vmem:[#allocation3] sm:$0xff] }
 0x118   : > { %s2576_s18 = scalar_lea.vmem [#allocation2], %s1844_s16  ;;  %v972_v10 = vld [vmem:[#allocation3 + $0x58] sm:$0xff]  ;;  %v979_v27 = vld [vmem:[#allocation3 + $0x20] sm:$0xff]  ;;  %v976_v32 = vld [vmem:[#allocation3 + $0x8] sm:$0xff] }
 0x119   : > { %v2347_v60 = vld [vmem:[%s2576_s18 + $0x38] sm:$0xff]   ;;  %v2348_v61 = vld [vmem:[%s2576_s18 + $0x30] sm:$0xff]   ;;  %v2349_v62 = vld [vmem:[%s2576_s18 + $0x28] sm:$0xff]  }
 0x11a   : > { %2135 = vmatprep.subr.bf16.mxu0 %v2347_v60  ;;  %2270 = vmatprep.subr.bf16.mxu1 %v2347_v60  ;;  %v2350_v63 = vld [vmem:[%s2576_s18 + $0x20] sm:$0xff]   ;;  %v2351_v0 = vld [vmem:[%s2576_s18 + $0x18] sm:$0xff]   ;;  %v2352_v1 = vld [vmem:[%s2576_s18 + $0x10] sm:$0xff]  }
 0x11b   : > { %2136 = vmatpush3.bf16.msra.mxu0 %v2347_v60  ;;  %2278 = vmatpush3.bf16.msra.mxu1 %v2347_v60  ;;  %v2353_v2 = vld [vmem:[%s2576_s18 + $0x8] sm:$0xff]   ;;  %v2354_v3 = vld [vmem:[%s2576_s18] sm:$0xff]   ;;  %v973_v20 = vld [vmem:[#allocation3 + $0x18] sm:$0xff] }
 0x11c   : > { %2137 = vmatprep.subr.bf16.mxu0 %v2348_v61  ;;  %2271 = vmatprep.subr.bf16.mxu1 %v2348_v61  ;;  %v981_v21 = vld [vmem:[#allocation3 + $0x38] sm:$0xff]  ;;  %v974_v38 = vld [vmem:[#allocation3 + $0x50] sm:$0xff]  ;;  %v982_v39 = vld [vmem:[#allocation3 + $0x60] sm:$0xff] }
 0x11d   : > { %v984_v33 = vld [vmem:[#allocation3 + $0x78] sm:$0xff]  ;;  %v977_v44 = vld [vmem:[#allocation3 + $0x48] sm:$0xff]  ;;  %v983_v51 = vld [vmem:[#allocation3 + $0x70] sm:$0xff] }
 0x11e   : > { %v985_v45 = vld [vmem:[#allocation3 + $0x28] sm:$0xff] }
 0x11f   : > { %2138 = vmatpush3.bf16.msra.mxu0 %v2348_v61  ;;  %2279 = vmatpush3.bf16.msra.mxu1 %v2348_v61  ;;  %v975_v50 = vld [vmem:[#allocation3 + $0x68] sm:$0xff] }
 0x120   : > { %2139 = vmatprep.subr.bf16.mxu0 %v2349_v62  ;;  %2272 = vmatprep.subr.bf16.mxu1 %v2349_v62 }
 0x123   : > { %2140 = vmatpush3.bf16.msra.mxu0 %v2349_v62  ;;  %2280 = vmatpush3.bf16.msra.mxu1 %v2349_v62 }
 0x124   : > { %2141 = vmatprep.subr.bf16.mxu0 %v2350_v63  ;;  %2273 = vmatprep.subr.bf16.mxu1 %v2350_v63 }
 0x127   : > { %2142 = vmatpush3.bf16.msra.mxu0 %v2350_v63  ;;  %2281 = vmatpush3.bf16.msra.mxu1 %v2350_v63 }
 0x128   : > { %2143 = vmatprep.subr.bf16.mxu0 %v2351_v0  ;;  %2274 = vmatprep.subr.bf16.mxu1 %v2351_v0 }
 0x12b   : > { %2144 = vmatpush3.bf16.msra.mxu0 %v2351_v0  ;;  %2282 = vmatpush3.bf16.msra.mxu1 %v2351_v0 }
 0x12c   : > { %2145 = vmatprep.subr.bf16.mxu0 %v2352_v1  ;;  %2275 = vmatprep.subr.bf16.mxu1 %v2352_v1 }
 0x12f   : > { %2146 = vmatpush3.bf16.msra.mxu0 %v2352_v1  ;;  %2283 = vmatpush3.bf16.msra.mxu1 %v2352_v1 }
 0x130   : > { %2147 = vmatprep.subr.bf16.mxu0 %v2353_v2  ;;  %2276 = vmatprep.subr.bf16.mxu1 %v2353_v2 }
 0x133   : > { %2148 = vmatpush3.bf16.msra.mxu0 %v2353_v2  ;;  %2284 = vmatpush3.bf16.msra.mxu1 %v2353_v2 }
 0x134   : > { %2149 = vmatprep.subr.bf16.mxu0 %v2354_v3  ;;  %2277 = vmatprep.subr.bf16.mxu1 %v2354_v3 }
 0x137   : > { %2150 = vmatpush3.bf16.msra.mxu0 %v2354_v3  ;;  %2285 = vmatpush3.bf16.msra.mxu1 %v2354_v3 }
 0x13a   : > { %2152 = vmatmul.mubr.bf16.vlgmr.msra.gmra.mxu0 %v2357_v4  ;;  %2160 = vmatmul.mubr.bf16.vlgmr.msra.gmra.mxu1 %v2358_v5 }
 0x13b   : > { %2155 = vmatprep.mubr.bf16.mxu0 %v2359_v6  ;;  %2163 = vmatprep.mubr.bf16.mxu1 %v2360_v7 }
 0x142   : > { %2156 = vmatmul.mubr.bf16.gmra.mxu0 %v2361_v8  ;;  %2164 = vmatmul.mubr.bf16.gmra.mxu1 %v2362_v9 }
 0x1fa   : > { %v2153_v12 = vpop.f32.mrf.mxu0  ;;  %v2161_v13 = vpop.f32.mrf.mxu1 }
 0x1fb   : > { %v1197_v16 = vadd.f32 %v2153_v12, %v972_v10  ;;  %v1205_v17 = vadd.f32 %v2161_v13, %v980_v11 }
 0x1fc   : > { %v1132_v18 = vpop.f32.mrf.mxu0  ;;  %v1164_v19 = vpop.f32.mrf.mxu1 }
 0x1fd   : > { %1213 = vst [vmem:[#allocation3 + $0x58] sm:$0xff] %v1197_v16  ;;  %1221 = vst [vmem:[#allocation3 + $0x10] sm:$0xff] %v1205_v17  ;;  %v1195_v22 = vadd.f32 %v1132_v18, %v970_v14  ;;  %v1203_v23 = vadd.f32 %v1164_v19, %v978_v15 }
 0x1fe   : > { %v2154_v24 = vpop.f32.mrf.mxu0  ;;  %v2162_v25 = vpop.f32.mrf.mxu1 }
 0x1ff   : > { %1211 = vst [vmem:[#allocation3 + $0x30] sm:$0xff] %v1195_v22  ;;  %1219 = vst [vmem:[#allocation3 + $0x40] sm:$0xff] %v1203_v23  ;;  %v1198_v28 = vadd.f32 %v2154_v24, %v973_v20  ;;  %v1206_v29 = vadd.f32 %v2162_v25, %v981_v21 }
 0x200   : > { %v1135_v30 = vpop.f32.mrf.mxu0  ;;  %v1167_v31 = vpop.f32.mrf.mxu1 }
 0x201   : > { %1214 = vst [vmem:[#allocation3 + $0x18] sm:$0xff] %v1198_v28  ;;  %1222 = vst [vmem:[#allocation3 + $0x38] sm:$0xff] %v1206_v29  ;;  %v1196_v34 = vadd.f32 %v1135_v30, %v971_v26  ;;  %v1204_v35 = vadd.f32 %v1167_v31, %v979_v27 }
 0x202   : > { %v2157_v36 = vpop.f32.mrf.mxu0  ;;  %v2165_v37 = vpop.f32.mrf.mxu1 }
 0x203   : > { %1212 = vst [vmem:[#allocation3] sm:$0xff] %v1196_v34  ;;  %1220 = vst [vmem:[#allocation3 + $0x20] sm:$0xff] %v1204_v35  ;;  %v1201_v40 = vadd.f32 %v2157_v36, %v976_v32  ;;  %v1209_v41 = vadd.f32 %v2165_v37, %v984_v33 }
 0x204   : > { %v1148_v42 = vpop.f32.mrf.mxu0  ;;  %v1180_v43 = vpop.f32.mrf.mxu1 }
 0x205   : > { %1217 = vst [vmem:[#allocation3 + $0x8] sm:$0xff] %v1201_v40  ;;  %1225 = vst [vmem:[#allocation3 + $0x78] sm:$0xff] %v1209_v41  ;;  %v1199_v46 = vadd.f32 %v1148_v42, %v974_v38  ;;  %v1207_v47 = vadd.f32 %v1180_v43, %v982_v39 }
 0x206   : > { %v2158_v48 = vpop.f32.mrf.mxu0  ;;  %v2166_v49 = vpop.f32.mrf.mxu1 }
 0x207   : > { %1215 = vst [vmem:[#allocation3 + $0x50] sm:$0xff] %v1199_v46  ;;  %1223 = vst [vmem:[#allocation3 + $0x60] sm:$0xff] %v1207_v47  ;;  %v1202_v52 = vadd.f32 %v2158_v48, %v977_v44  ;;  %v1210_v53 = vadd.f32 %v2166_v49, %v985_v45 }
 0x208   : > { %v1151_v54 = vpop.f32.mrf.mxu0  ;;  %v1183_v55 = vpop.f32.mrf.mxu1 }
 0x209   : > { %1218 = vst [vmem:[#allocation3 + $0x48] sm:$0xff] %v1202_v52  ;;  %1226 = vst [vmem:[#allocation3 + $0x28] sm:$0xff] %v1210_v53  ;;  %v1200_v56 = vadd.f32 %v1151_v54, %v975_v50  ;;  %v1208_v57 = vadd.f32 %v1183_v55, %v983_v51 }
 0x20b   : > { %1216 = vst [vmem:[#allocation3 + $0x68] sm:$0xff] %v1200_v56  ;;  %1224 = vst [vmem:[#allocation3 + $0x70] sm:$0xff] %v1208_v57 }
 0x20c PF: > { %v2363_v58 = vld [vmem:[%s2503_s13 + $0x38] sm:$0xff]   ;;  %v2364_v59 = vld [vmem:[%s2503_s13 + $0x30] sm:$0xff]   ;;  %v2365_v60 = vld [vmem:[%s2503_s13 + $0x28] sm:$0xff]   ;;  %s1932_s19 = sshll.u32 %s2707_s28, 6  ;;  %p1888_p12 = scmp.ne.s32.totalorder %s2385_s21, 2 }
 0x20d   : > { %2167 = vmatprep.subr.bf16.mxu0 %v2363_v58  ;;  %2286 = vmatprep.subr.bf16.mxu1 %v2363_v58  ;;  %v2366_v61 = vld [vmem:[%s2503_s13 + $0x20] sm:$0xff]   ;;  %v1230_v62 = vld [vmem:[#allocation3 + $0x30] sm:$0xff]  ;;  %v2367_v4 = vld [vmem:[%s2503_s13 + $0x18] sm:$0xff]   ;;  %s2606_s25 = scalar_lea.vmem [#allocation2], %s1932_s19 }
 0x20e   : > { %2168 = vmatpush3.bf16.msra.mxu0 %v2363_v58  ;;  %2294 = vmatpush3.bf16.msra.mxu1 %v2363_v58  ;;  %v1231_v63 = vld [vmem:[#allocation3] sm:$0xff]  ;;  %v2368_v5 = vld [vmem:[%s2503_s13 + $0x10] sm:$0xff]   ;;  %v2369_v6 = vld [vmem:[%s2503_s13 + $0x8] sm:$0xff]  }
 0x20f   : > { %2169 = vmatprep.subr.bf16.mxu0 %v2364_v59  ;;  %2287 = vmatprep.subr.bf16.mxu1 %v2364_v59  ;;  %v1238_v0 = vld [vmem:[#allocation3 + $0x40] sm:$0xff]  ;;  %v1246_v1 = vpack.c.bf16 %v1231_v63, %v1230_v62  ;;  %v1232_v8 = vld [vmem:[#allocation3 + $0x58] sm:$0xff]  ;;  %v1240_v10 = vld [vmem:[#allocation3 + $0x10] sm:$0xff] }
 0x210   : > { %v1239_v2 = vld [vmem:[#allocation3 + $0x20] sm:$0xff]  ;;  %v1233_v9 = vld [vmem:[#allocation3 + $0x18] sm:$0xff]  ;;  %v1234_v12 = vld [vmem:[#allocation3 + $0x50] sm:$0xff] }
 0x211   : > { %v1250_v3 = vpack.c.bf16 %v1239_v2, %v1238_v0  ;;  %2183 = vmatprep.mubr.bf16.mxu0 %v1246_v1  ;;  %v2370_v7 = vld [vmem:[%s2503_s13] sm:$0xff]   ;;  %v1241_v11 = vld [vmem:[#allocation3 + $0x38] sm:$0xff]  ;;  %v1247_v16 = vpack.c.bf16 %v1233_v9, %v1232_v8  ;;  %v1236_v20 = vld [vmem:[#allocation3 + $0x8] sm:$0xff] }
 0x212   : > { %2170 = vmatpush3.bf16.msra.mxu0 %v2364_v59  ;;  %2295 = vmatpush3.bf16.msra.mxu1 %v2364_v59  ;;  %v1235_v13 = vld [vmem:[#allocation3 + $0x68] sm:$0xff]  ;;  %v1242_v14 = vld [vmem:[#allocation3 + $0x60] sm:$0xff]  ;;  %v1243_v15 = vld [vmem:[#allocation3 + $0x70] sm:$0xff]  ;;  %v1251_v17 = vpack.c.bf16 %v1241_v11, %v1240_v10 }
 0x213   : > { %2171 = vmatprep.subr.bf16.mxu0 %v2365_v60  ;;  %2288 = vmatprep.subr.bf16.mxu1 %v2365_v60  ;;  %v1248_v18 = vpack.c.bf16 %v1235_v13, %v1234_v12  ;;  %v1252_v19 = vpack.c.bf16 %v1243_v15, %v1242_v14  ;;  %v1237_v21 = vld [vmem:[#allocation3 + $0x48] sm:$0xff]  ;;  %v1244_v22 = vld [vmem:[#allocation3 + $0x78] sm:$0xff]  ;;  %v1861_v26 = vld [vmem:[%s570_s29] ss:$0 sm:$0xff] }
 0x214   : > { %2191 = vmatprep.mubr.bf16.mxu1 %v1250_v3  ;;  %v1245_v23 = vld [vmem:[#allocation3 + $0x28] sm:$0xff]  ;;  %v1249_v24 = vpack.c.bf16 %v1237_v21, %v1236_v20 }
 0x215   : > { %v1253_v25 = vpack.c.bf16 %v1245_v23, %v1244_v22 }
 0x216   : > { %2172 = vmatpush3.bf16.msra.mxu0 %v2365_v60  ;;  %2296 = vmatpush3.bf16.msra.mxu1 %v2365_v60 }
 0x217   : > { %2173 = vmatprep.subr.bf16.mxu0 %v2366_v61  ;;  %2289 = vmatprep.subr.bf16.mxu1 %v2366_v61 }
 0x21a   : > { %2174 = vmatpush3.bf16.msra.mxu0 %v2366_v61  ;;  %2297 = vmatpush3.bf16.msra.mxu1 %v2366_v61 }
 0x21b   : > { %2175 = vmatprep.subr.bf16.mxu0 %v2367_v4  ;;  %2290 = vmatprep.subr.bf16.mxu1 %v2367_v4 }
 0x21e   : > { %2176 = vmatpush3.bf16.msra.mxu0 %v2367_v4  ;;  %2298 = vmatpush3.bf16.msra.mxu1 %v2367_v4 }
 0x21f   : > { %2177 = vmatprep.subr.bf16.mxu0 %v2368_v5  ;;  %2291 = vmatprep.subr.bf16.mxu1 %v2368_v5 }
 0x222   : > { %2178 = vmatpush3.bf16.msra.mxu0 %v2368_v5  ;;  %2299 = vmatpush3.bf16.msra.mxu1 %v2368_v5 }
 0x223   : > { %2179 = vmatprep.subr.bf16.mxu0 %v2369_v6  ;;  %2292 = vmatprep.subr.bf16.mxu1 %v2369_v6 }
 0x226   : > { %2180 = vmatpush3.bf16.msra.mxu0 %v2369_v6  ;;  %2300 = vmatpush3.bf16.msra.mxu1 %v2369_v6 }
 0x227   : > { %2181 = vmatprep.subr.bf16.mxu0 %v2370_v7  ;;  %2293 = vmatprep.subr.bf16.mxu1 %v2370_v7 }
 0x22a   : > { %2182 = vmatpush3.bf16.msra.mxu0 %v2370_v7  ;;  %2301 = vmatpush3.bf16.msra.mxu1 %v2370_v7 }
 0x22d   : > { %2184 = vmatmul.mubr.bf16.vlgmr.msra.gmra.mxu0 %v1247_v16  ;;  %2192 = vmatmul.mubr.bf16.vlgmr.msra.gmra.mxu1 %v1251_v17 }
 0x22e   : > { %2187 = vmatprep.mubr.bf16.mxu0 %v1248_v18  ;;  %2195 = vmatprep.mubr.bf16.mxu1 %v1252_v19 }
 0x235   : > { %2188 = vmatmul.mubr.bf16.gmra.mxu0 %v1249_v24  ;;  %2196 = vmatmul.mubr.bf16.gmra.mxu1 %v1253_v25 }
 0x2ed   : > { %v2185_v27 = vpop.f32.mrf.mxu0  ;;  %v2193_v28 = vpop.f32.mrf.mxu1 }
 0x2ee   : > { %v1368_v29 = vadd.f32 %v2185_v27, %v1861_v26  ;;  %v1400_v30 = vadd.f32 %v2193_v28, %v1861_v26 }
 0x2ef   : > { %v1359_v31 = vpop.f32.mrf.mxu0  ;;  %v1391_v32 = vpop.f32.mrf.mxu1 }
 0x2f0   : > { %v1360_v33 = vadd.f32 %v1861_v26, %v1359_v31  ;;  %v1392_v34 = vadd.f32 %v1861_v26, %v1391_v32  ;;  %v1424_v39 = vmax.f32 %v1368_v29, 0.0  ;;  %v1432_v40 = vmax.f32 %v1400_v30, 0.0 }
 0x2f1   : > { %v2186_v35 = vpop.f32.mrf.mxu0  ;;  %v2194_v36 = vpop.f32.mrf.mxu1 }
 0x2f2   : > { %v1371_v37 = vadd.f32 %v2186_v35, %v1861_v26  ;;  %v1403_v38 = vadd.f32 %v2194_v36, %v1861_v26  ;;  %v1422_v47 = vmax.f32 %v1360_v33, 0.0  ;;  %v1430_v48 = vmax.f32 %v1392_v34, 0.0 }
 0x2f3   : > { %v1362_v41 = vpop.f32.mrf.mxu0  ;;  %v1394_v42 = vpop.f32.mrf.mxu1 }
 0x2f4   : > { %v1425_v43 = vmax.f32 %v1371_v37, 0.0  ;;  %v1433_v44 = vmax.f32 %v1403_v38, 0.0  ;;  %v1363_v45 = vadd.f32 %v1861_v26, %v1362_v41  ;;  %v1395_v46 = vadd.f32 %v1861_v26, %v1394_v42 }
 0x2f5   : > { %v2189_v49 = vpop.f32.mrf.mxu0  ;;  %v2197_v50 = vpop.f32.mrf.mxu1 }
 0x2f6   : > { %v1439_v51 = vpack.c.bf16 %v1425_v43, %v1424_v39  ;;  %v1443_v52 = vpack.c.bf16 %v1433_v44, %v1432_v40  ;;  %v1423_v53 = vmax.f32 %v1363_v45, 0.0  ;;  %v1431_v54 = vmax.f32 %v1395_v46, 0.0 }
 0x2f7   : > { %v1384_v55 = vadd.f32 %v2189_v49, %v1861_v26  ;;  %v1416_v56 = vadd.f32 %v2197_v50, %v1861_v26  ;;  %v1375_v57 = vpop.f32.mrf.mxu0  ;;  %v1407_v58 = vpop.f32.mrf.mxu1 }
 0x2f8   : > { %2022 = vst [vmem:[%s2606_s25 + $0x8] sm:$0xff] %v1439_v51   ;;  %2026 = vst [vmem:[%s2606_s25 + $0x28] sm:$0xff] %v1443_v52   ;;  %v1438_v59 = vpack.c.bf16 %v1423_v53, %v1422_v47  ;;  %v1442_v60 = vpack.c.bf16 %v1431_v54, %v1430_v48  ;;  %v1376_v61 = vadd.f32 %v1861_v26, %v1375_v57 }
 0x2f9   : > { %v1408_v62 = vadd.f32 %v1861_v26, %v1407_v58  ;;  %v2190_v63 = vpop.f32.mrf.mxu0  ;;  %v2198_v0 = vpop.f32.mrf.mxu1  ;;  %v1428_v3 = vmax.f32 %v1384_v55, 0.0  ;;  %v1436_v4 = vmax.f32 %v1416_v56, 0.0 }
 0x2fa   : > { %1979 = vst [vmem:[%s2606_s25] sm:$0xff] %v1438_v59   ;;  %2025 = vst [vmem:[%s2606_s25 + $0x20] sm:$0xff] %v1442_v60   ;;  %v1387_v1 = vadd.f32 %v2190_v63, %v1861_v26  ;;  %v1419_v2 = vadd.f32 %v2198_v0, %v1861_v26  ;;  %v1426_v11 = vmax.f32 %v1376_v61, 0.0 }
 0x2fb   : > { %v1378_v5 = vpop.f32.mrf.mxu0  ;;  %v1410_v6 = vpop.f32.mrf.mxu1  ;;  %v1434_v12 = vmax.f32 %v1408_v62, 0.0 }
 0x2fc   : > { %v1429_v7 = vmax.f32 %v1387_v1, 0.0  ;;  %v1437_v8 = vmax.f32 %v1419_v2, 0.0  ;;  %v1379_v9 = vadd.f32 %v1861_v26, %v1378_v5  ;;  %v1411_v10 = vadd.f32 %v1861_v26, %v1410_v6 }
 0x2fe   : > { %v1441_v13 = vpack.c.bf16 %v1429_v7, %v1428_v3  ;;  %v1445_v14 = vpack.c.bf16 %v1437_v8, %v1436_v4  ;;  %v1427_v15 = vmax.f32 %v1379_v9, 0.0  ;;  %v1435_v16 = vmax.f32 %v1411_v10, 0.0  ;;  %1527 = sbr.rel (%p1888_p12) target bundleno = 1003 (0x3eb), region = 80 }
 0x300   : > { %2024 = vst [vmem:[%s2606_s25 + $0x18] sm:$0xff] %v1441_v13   ;;  %2028 = vst [vmem:[%s2606_s25 + $0x38] sm:$0xff] %v1445_v14   ;;  %v1440_v17 = vpack.c.bf16 %v1427_v15, %v1426_v11  ;;  %v1444_v18 = vpack.c.bf16 %v1435_v16, %v1434_v12 }
 0x302   : > { %2023 = vst [vmem:[%s2606_s25 + $0x10] sm:$0xff] %v1440_v17   ;;  %2027 = vst [vmem:[%s2606_s25 + $0x30] sm:$0xff] %v1444_v18  }
 0x303   : > { %v2396_v19 = vmov 0.0   ;;  %vm2397_vm0 = vmmov 0   ;;  %v1534_v20 = vld [vmem:[%s2688_s4] sm:$0xf] }
 0x304   : > { %2199 = vmatprep.subr.bf16.mxu0 %v2396_v19  ;;  %2215 = vmatprep.mubr.msk.bf16.mxu0 %vm2397_vm0, %v2396_v19 }
 0x305   : > { %2200 = vmatpush3.bf16.msra.mxu0 %v1445_v14 }
 0x306   : > { %2201 = vmatprep.subr.bf16.mxu0 %v2396_v19 }
 0x309   : > { %2202 = vmatpush3.bf16.msra.mxu0 %v1444_v18 }
 0x30a   : > { %2203 = vmatprep.subr.bf16.mxu0 %v2396_v19 }
 0x30d   : > { %2204 = vmatpush3.bf16.msra.mxu0 %v1443_v52 }
 0x30e   : > { %2205 = vmatprep.subr.bf16.mxu0 %v2396_v19 }
 0x311   : > { %2206 = vmatpush3.bf16.msra.mxu0 %v1442_v60 }
 0x312   : > { %2207 = vmatprep.subr.bf16.mxu0 %v2396_v19 }
 0x315   : > { %2208 = vmatpush3.bf16.msra.mxu0 %v1441_v13 }
 0x316   : > { %2209 = vmatprep.subr.bf16.mxu0 %v2396_v19 }
 0x319   : > { %2210 = vmatpush3.bf16.msra.mxu0 %v1440_v17 }
 0x31a   : > { %2211 = vmatprep.subr.bf16.mxu0 %v2396_v19 }
 0x31d   : > { %2212 = vmatpush3.bf16.msra.mxu0 %v1439_v51 }
 0x31e   : > { %2213 = vmatprep.subr.bf16.mxu0 %v2396_v19 }
 0x321   : > { %2214 = vmatpush3.bf16.msra.mxu0 %v1438_v59 }
 0x324   : > { %2216 = vmatmul.mubr.bf16.vlgmr.msra.gmra.mxu0 %v1534_v20 }
 0x3e4   : > { %v1569_v21 = vpop.f32.mrf.mxu0 }
 0x3e5   : > { %1576 = vst [vmem:[#allocation4] sm:$0xff] %v1569_v21 }
 0x3e6   : > { %v2217_v22 = vpop.f32.mrf.mxu0 }
 0x3e8   : > { %v1572_v23 = vpop.f32.mrf.mxu0 }
 0x3ea   : > { %v2218_v24 = vpop.f32.mrf.mxu0 }
 0x3eb PF: > { %p1577_p13 = scmp.eq.s32.totalorder %s2385_s21, 2 }
 0x3ec   : > { %v1601_v25 = vld [vmem:[%s2693_s9 + $0x78] sm:$0xff] (%p1577_p13)  ;;  %v2398_v26 = vmov (%p1577_p13), 0.0   ;;  %v1600_v27 = vld [vmem:[%s2693_s9 + $0x70] sm:$0xff] (%p1577_p13)  ;;  %vm2399_vm1 = vmmov (%p1577_p13), 0   ;;  %v1599_v28 = vld [vmem:[%s2693_s9 + $0x68] sm:$0xff] (%p1577_p13) }
 0x3ed   : > { %1584 = sbr.rel (!%p1577_p13) target bundleno = 1233 (0x4d1), region = 88  ;;  %2219 = vmatprep.subr.mxu0 (%p1577_p13), %v2398_v26  ;;  %2251 = vmatprep.mubr.msk.f32.mxu0 (%p1577_p13), %vm2399_vm1, %v2398_v26  ;;  %v1598_v29 = vld [vmem:[%s2693_s9 + $0x60] sm:$0xff] (%p1577_p13)  ;;  %v1597_v30 = vld [vmem:[%s2693_s9 + $0x58] sm:$0xff] (%p1577_p13)  ;;  %v1596_v31 = vld [vmem:[%s2693_s9 + $0x50] sm:$0xff] (%p1577_p13) }
 0x3ee   : > { %2220 = vmatpush3.msra.mxu0 (%p1577_p13), %v1601_v25  ;;  %v1595_v32 = vld [vmem:[%s2693_s9 + $0x48] sm:$0xff] (%p1577_p13)  ;;  %v1594_v33 = vld [vmem:[%s2693_s9 + $0x40] sm:$0xff] (%p1577_p13)  ;;  %v1593_v34 = vld [vmem:[%s2693_s9 + $0x38] sm:$0xff] (%p1577_p13) }
 0x3ef   : > { %2221 = vmatprep.subr.mxu0 (%p1577_p13), %v2398_v26  ;;  %v1592_v35 = vld [vmem:[%s2693_s9 + $0x30] sm:$0xff] (%p1577_p13)  ;;  %v1591_v36 = vld [vmem:[%s2693_s9 + $0x28] sm:$0xff] (%p1577_p13)  ;;  %v1590_v37 = vld [vmem:[%s2693_s9 + $0x20] sm:$0xff] (%p1577_p13) }
 0x3f0   : > { %2222 = vmatpush3.msra.mxu0 (%p1577_p13), %v1600_v27  ;;  %v1589_v38 = vld [vmem:[%s2693_s9 + $0x18] sm:$0xff] (%p1577_p13)  ;;  %v1588_v39 = vld [vmem:[%s2693_s9 + $0x10] sm:$0xff] (%p1577_p13)  ;;  %v1587_v40 = vld [vmem:[%s2693_s9 + $0x8] sm:$0xff] (%p1577_p13) }
 0x3f1   : > { %2223 = vmatprep.subr.mxu0 (%p1577_p13), %v2398_v26  ;;  %v1586_v41 = vld [vmem:[%s2693_s9] sm:$0xff] (%p1577_p13) }
 0x3f2   : > { %2224 = vmatpush3.msra.mxu0 %v1599_v28  ;;  %v1585_v42 = vld [vmem:[#allocation4] sm:$0xff] }
 0x3f3   : > { %2225 = vmatprep.subr.mxu0 %v2398_v26  ;;  %v1891_v43 = vld [vmem:[%s2694_s10] ss:$0 sm:$0xff] }
 0x3f4   : > { %2226 = vmatpush3.msra.mxu0 %v1598_v29 }
 0x3f5   : > { %2227 = vmatprep.subr.mxu0 %v2398_v26 }
 0x3f6   : > { %2228 = vmatpush3.msra.mxu0 %v1597_v30 }
 0x3f7   : > { %2229 = vmatprep.subr.mxu0 %v2398_v26 }
 0x3f8   : > { %2230 = vmatpush3.msra.mxu0 %v1596_v31 }
 0x3f9   : > { %2231 = vmatprep.subr.mxu0 %v2398_v26 }
 0x3fa   : > { %2232 = vmatpush3.msra.mxu0 %v1595_v32 }
 0x3fb   : > { %2233 = vmatprep.subr.mxu0 %v2398_v26 }
 0x3fc   : > { %2234 = vmatpush3.msra.mxu0 %v1594_v33 }
 0x3fd   : > { %2235 = vmatprep.subr.mxu0 %v2398_v26 }
 0x3fe   : > { %2236 = vmatpush3.msra.mxu0 %v1593_v34 }
 0x3ff   : > { %2237 = vmatprep.subr.mxu0 %v2398_v26 }
 0x400   : > { %2238 = vmatpush3.msra.mxu0 %v1592_v35 }
 0x401   : > { %2239 = vmatprep.subr.mxu0 %v2398_v26 }
 0x402   : > { %2240 = vmatpush3.msra.mxu0 %v1591_v36 }
 0x403   : > { %2241 = vmatprep.subr.mxu0 %v2398_v26 }
 0x404   : > { %2242 = vmatpush3.msra.mxu0 %v1590_v37 }
 0x405   : > { %2243 = vmatprep.subr.mxu0 %v2398_v26 }
 0x406   : > { %2244 = vmatpush3.msra.mxu0 %v1589_v38 }
 0x407   : > { %2245 = vmatprep.subr.mxu0 %v2398_v26 }
 0x408   : > { %2246 = vmatpush3.msra.mxu0 %v1588_v39 }
 0x409   : > { %2247 = vmatprep.subr.mxu0 %v2398_v26 }
 0x40a   : > { %2248 = vmatpush3.msra.mxu0 %v1587_v40 }
 0x40b   : > { %2249 = vmatprep.subr.mxu0 %v2398_v26 }
 0x40c   : > { %2250 = vmatpush3.msra.mxu0 %v1586_v41 }
 0x40d   : > { %2252 = vmatmul.mubr.f32.vlgmr.msra.gmra.mxu0 %v1585_v42 }
 0x4cd   : > { %v1675_v44 = vpop.f32.mrf.mxu0 }
 0x4ce   : > { %v1676_v45 = vadd.f32 %v1891_v43, %v1675_v44 }
 0x4cf   : > { %v2253_v46 = vpop.f32.mrf.mxu0 }
 0x4d0   : > { %1679 = vst [vmem:[%s2695_s11] sm:$0xff] %v1676_v45 }
 0x4d1 PF: > { %s23_s23 = sadd.s32 1, %s2393_s23   ;;  %s2696_s21 = smov %s2389_s22 }
 0x4d2   : > { %p20_p0 = scmp.ge.s32.totalorder %s23_s23, 5   ;;  %s2697_s22 = smov %s2699_s0 }
 0x4d4   :  { %22 = sbr.rel (!%p20_p0) target bundleno = 3 (0x3), region = 129 }

</bundles_post_ra>
